<compile_context>
chip_gen: v5e
topology: v5e:2x2
jax: 0.10.0
libtpu: 0.0.40
codegen_flags: <defaults>
</compile_context>

<pallas_src>
import functools

import jax
import jax.numpy as jnp
from jax import lax
from jax.experimental import pallas as pl
from jax.experimental.pallas import tpu as pltpu


def _mlp_kernel(x_ref, w1_ref, b1_ref, w2_ref, b2_ref, o_ref, *, num_hidden):
    # x_ref:  (TB, H)       bf16  — batch rows on sublanes, features on lanes
    # w1_ref: (L-1, H, H)   bf16  — PyTorch (out, in) layout per layer
    # b1_ref: (L-1, 1, H)   f32
    # w2_ref: (O, H)        bf16  — PyTorch (out, in) layout
    # b2_ref: (O, 1)        f32
    # o_ref:  (O, TB)       f32   — lane-dense output slab
    h = x_ref[...]                                    # bf16
    acc = None
    for i in range(num_hidden):                       # static unroll; L is a Python const
        acc = lax.dot_general(
            h, w1_ref[i],
            dimension_numbers=(((1,), (1,)), ((), ())),   # contract the "in" dims (no transpose)
            preferred_element_type=jnp.float32)
        acc = jnp.maximum(acc + b1_ref[i], 0.0)       # bias + ReLU in f32 on the VPU
        h = acc.astype(x_ref.dtype)                   # back to bf16 for the next MXU pass
    # Final projection: (O, H) x (TB, H) -> (O, TB), lane-dense, native layout.
    y = lax.dot_general(
        w2_ref[...], h,
        dimension_numbers=(((1,), (1,)), ((), ())),
        preferred_element_type=jnp.float32)
    o_ref[...] = (y + b2_ref[...]).astype(o_ref.dtype)


def _pick_block_b(B):
    # Whole batch as one MXU M-tile when it is small; otherwise 128–512-row
    # tiles (multiples of 128 keep the lane-dense (O, block_b) output block
    # legal) to amortize per-grid-step overhead.
    if B <= 512:
        return B
    for cand in (512, 384, 256, 128):
        if B % cand == 0:
            return cand
    return B  # awkward batch size: fall back to a single tile (grid=(1,))


def decoder_mlp_forward(x, w1, b1, w2, b2):
    """Pallas implementation of decoder_MLP.forward.

    x : (B, H)        w1: (L-1, H, H) PyTorch (out, in)   b1: (L-1, H)
    w2: (O, H)        b2: (O,)
    returns (B,) when O == 1 (matching .squeeze(-1)), else (B, O).
    """
    B, H = x.shape
    Lm1 = w1.shape[0]
    O = w2.shape[0]

    block_b = _pick_block_b(B)
    grid = (B // block_b,)

    # bf16 matmul operands (halves HBM->VMEM bytes, MXU-native); f32 biases.
    x_bf = x.astype(jnp.bfloat16)
    w1_bf = w1.astype(jnp.bfloat16)
    w2_bf = w2.astype(jnp.bfloat16)
    b1_r = b1.reshape(Lm1, 1, H).astype(jnp.float32)
    b2_r = b2.reshape(O, 1).astype(jnp.float32)

    kernel = functools.partial(_mlp_kernel, num_hidden=Lm1)

    # Advisory cost estimate for XLA's scheduler.
    flops = 2 * B * H * H * Lm1 + 2 * B * H * O
    bytes_accessed = (x.size * 2 + w1.size * 2 + b1.size * 4
                      + w2.size * 2 + b2.size * 4 + B * O * 4)
    cost = pl.CostEstimate(flops=int(flops), transcendentals=0,
                           bytes_accessed=int(bytes_accessed))

    # VMEM budget: weights/biases are constant-index (resident) but still
    # double-buffered by default; raise the scoped limit only when needed
    # (e.g. large H on v7x's 64 MiB VMEM).
    weight_bytes = w1.size * 2 + b1.size * 4 + w2.size * 2 + b2.size * 4
    tile_bytes = block_b * H * 2 + O * block_b * 4
    vmem_need = 2 * (weight_bytes + tile_bytes)
    cp_kwargs = {}
    if vmem_need > 24 * 1024 * 1024:
        cp_kwargs["vmem_limit_bytes"] = min(int(vmem_need * 5 // 4), 64 * 1024 * 1024)

    dims = ("arbitrary",) if grid[0] == 1 else ("parallel",)

    y = pl.pallas_call(
        kernel,
        out_shape=jax.ShapeDtypeStruct((O, B), jnp.float32),
        grid_spec=pltpu.PrefetchScalarGridSpec(
            num_scalar_prefetch=0,
            grid=grid,
            in_specs=[
                pl.BlockSpec((block_b, H), lambda i: (i, 0)),     # x tile
                pl.BlockSpec((Lm1, H, H), lambda i: (0, 0, 0)),   # w1 (resident)
                pl.BlockSpec((Lm1, 1, H), lambda i: (0, 0, 0)),   # b1 (resident)
                pl.BlockSpec((O, H), lambda i: (0, 0)),           # w2 (resident)
                pl.BlockSpec((O, 1), lambda i: (0, 0)),           # b2 (resident)
            ],
            out_specs=pl.BlockSpec((O, block_b), lambda i: (0, i)),  # lane-dense slab
        ),
        compiler_params=pltpu.CompilerParams(
            dimension_semantics=dims, **cp_kwargs),
        cost_estimate=cost,
    )(x_bf, w1_bf, b1_r, w2_bf, b2_r)

    y = y.astype(x.dtype)                 # (O, B)
    return y.reshape(B) if O == 1 else y.T


def _reference(x, w1, b1, w2, b2):
    h = x
    for i in range(w1.shape[0]):
        h = jnp.maximum(h @ w1[i].T + b1[i], 0.0)
    y = h @ w2.T + b2
    return jnp.squeeze(y, axis=-1) if w2.shape[0] == 1 else y


if __name__ == "__main__":
    # Small shapes consistent with the module: batch=16, hidden=128,
    # output_dim=1 (so squeeze(-1) matters), L=3 (=> 2 hidden layers).
    B, H, O, L = 16, 128, 1, 3
    key = jax.random.PRNGKey(0)
    kx, kw1, kb1, kw2, kb2 = jax.random.split(key, 5)

    x = jax.random.normal(kx, (B, H), dtype=jnp.float32)
    w1 = jax.random.normal(kw1, (L - 1, H, H), dtype=jnp.float32) * 0.05
    b1 = jax.random.normal(kb1, (L - 1, H), dtype=jnp.float32) * 0.05
    w2 = jax.random.normal(kw2, (O, H), dtype=jnp.float32) * 0.05
    b2 = jax.random.normal(kb2, (O,), dtype=jnp.float32) * 0.05

    out = decoder_mlp_forward(x, w1, b1, w2, b2)
    out = jax.block_until_ready(out)

    ref = _reference(x, w1, b1, w2, b2)
    assert out.shape == ref.shape == (B,)
    # bf16 matmul operands with f32 accumulation -> loosened tolerance vs f32 ref.
    assert jnp.allclose(out, ref, atol=5e-2, rtol=5e-2), "mismatch vs reference"

    print("KERNEL_OK")
</pallas_src>

<mosaic_0001>
module attributes {stable_mosaic.version = 11 : i64} {
  func.func @_mlp_kernel(%arg0: i32, %arg1: memref<16x128xbf16, #tpu.memory_space<vmem>>, %arg2: memref<2x128x128xbf16, #tpu.memory_space<vmem>>, %arg3: memref<2x1x128xf32, #tpu.memory_space<vmem>>, %arg4: memref<1x128xbf16, #tpu.memory_space<vmem>>, %arg5: memref<1x1xf32, #tpu.memory_space<vmem>>, %arg6: memref<1x16xf32, #tpu.memory_space<vmem>>) attributes {dimension_semantics = [#tpu.dimension_semantics<arbitrary>], iteration_bounds = array<i64: 1>, scalar_prefetch = 0 : i64, scratch_operands = 0 : i64, tpu.core_type = #tpu.core_type<tc>, window_params = [{transform_indices = @transform_0, window_bounds = array<i64: 16, 128>}, {pipeline_mode = #tpu.pipeline_mode<synchronous>, transform_indices = @transform_1, window_bounds = array<i64: 2, 128, 128>}, {pipeline_mode = #tpu.pipeline_mode<synchronous>, transform_indices = @transform_2, window_bounds = array<i64: 2, 1, 128>}, {pipeline_mode = #tpu.pipeline_mode<synchronous>, transform_indices = @transform_3, window_bounds = array<i64: 1, 128>}, {pipeline_mode = #tpu.pipeline_mode<synchronous>, transform_indices = @transform_4, window_bounds = array<i64: 1, 1>}, {transform_indices = @transform_5, window_bounds = array<i64: 1, 16>}]} {
    %c0 = arith.constant 0 : index
    %c0_0 = arith.constant 0 : index
    %0 = vector.load %arg1[%c0, %c0_0] : memref<16x128xbf16, #tpu.memory_space<vmem>>, vector<16x128xbf16>
    %c0_1 = arith.constant 0 : index
    %c0_2 = arith.constant 0 : index
    %c0_3 = arith.constant 0 : index
    %1 = vector.load %arg2[%c0_1, %c0_2, %c0_3] : memref<2x128x128xbf16, #tpu.memory_space<vmem>>, vector<1x128x128xbf16>
    %2 = vector.shape_cast %1 : vector<1x128x128xbf16> to vector<128x128xbf16>
    %cst = arith.constant dense<0.000000e+00> : vector<16x128xf32>
    %3 = tpu.matmul %0, %2, %cst {dimension_numbers = #tpu.dot_dimension_numbers<[1], [1], [0], [0], [0, 0, 1, 0], [], []>} : vector<16x128xbf16>, vector<128x128xbf16>, vector<16x128xf32> -> vector<16x128xf32>
    %c0_4 = arith.constant 0 : index
    %c0_5 = arith.constant 0 : index
    %c0_6 = arith.constant 0 : index
    %4 = vector.load %arg3[%c0_4, %c0_5, %c0_6] : memref<2x1x128xf32, #tpu.memory_space<vmem>>, vector<1x1x128xf32>
    %5 = vector.shape_cast %4 : vector<1x1x128xf32> to vector<1x128xf32>
    %6 = vector.broadcast %5 : vector<1x128xf32> to vector<16x128xf32>
    %7 = arith.addf %3, %6 : vector<16x128xf32>
    %cst_7 = arith.constant 0.000000e+00 : f32
    %8 = vector.broadcast %cst_7 : f32 to vector<16x128xf32>
    %9 = arith.maximumf %7, %8 : vector<16x128xf32>
    %10 = arith.truncf %9 : vector<16x128xf32> to vector<16x128xbf16>
    %c1 = arith.constant 1 : index
    %c0_8 = arith.constant 0 : index
    %c0_9 = arith.constant 0 : index
    %11 = vector.load %arg2[%c1, %c0_8, %c0_9] : memref<2x128x128xbf16, #tpu.memory_space<vmem>>, vector<1x128x128xbf16>
    %12 = vector.shape_cast %11 : vector<1x128x128xbf16> to vector<128x128xbf16>
    %cst_10 = arith.constant dense<0.000000e+00> : vector<16x128xf32>
    %13 = tpu.matmul %10, %12, %cst_10 {dimension_numbers = #tpu.dot_dimension_numbers<[1], [1], [0], [0], [0, 0, 1, 0], [], []>} : vector<16x128xbf16>, vector<128x128xbf16>, vector<16x128xf32> -> vector<16x128xf32>
    %c1_11 = arith.constant 1 : index
    %c0_12 = arith.constant 0 : index
    %c0_13 = arith.constant 0 : index
    %14 = vector.load %arg3[%c1_11, %c0_12, %c0_13] : memref<2x1x128xf32, #tpu.memory_space<vmem>>, vector<1x1x128xf32>
    %15 = vector.shape_cast %14 : vector<1x1x128xf32> to vector<1x128xf32>
    %16 = vector.broadcast %15 : vector<1x128xf32> to vector<16x128xf32>
    %17 = arith.addf %13, %16 : vector<16x128xf32>
    %cst_14 = arith.constant 0.000000e+00 : f32
    %18 = vector.broadcast %cst_14 : f32 to vector<16x128xf32>
    %19 = arith.maximumf %17, %18 : vector<16x128xf32>
    %20 = arith.truncf %19 : vector<16x128xf32> to vector<16x128xbf16>
    %c0_15 = arith.constant 0 : index
    %c0_16 = arith.constant 0 : index
    %21 = vector.load %arg4[%c0_15, %c0_16] : memref<1x128xbf16, #tpu.memory_space<vmem>>, vector<1x128xbf16>
    %cst_17 = arith.constant dense<0.000000e+00> : vector<1x16xf32>
    %22 = tpu.matmul %21, %20, %cst_17 {dimension_numbers = #tpu.dot_dimension_numbers<[1], [1], [0], [0], [0, 0, 1, 0], [], []>} : vector<1x128xbf16>, vector<16x128xbf16>, vector<1x16xf32> -> vector<1x16xf32>
    %c0_18 = arith.constant 0 : index
    %c0_19 = arith.constant 0 : index
    %23 = vector.load %arg5[%c0_18, %c0_19] : memref<1x1xf32, #tpu.memory_space<vmem>>, vector<1x1xf32>
    %24 = vector.broadcast %23 : vector<1x1xf32> to vector<1x16xf32>
    %25 = arith.addf %22, %24 : vector<1x16xf32>
    %c0_20 = arith.constant 0 : index
    %c0_21 = arith.constant 0 : index
    %26 = vector.load %arg6[%c0_20, %c0_21] : memref<1x16xf32, #tpu.memory_space<vmem>>, vector<1x16xf32>
    tpu.vector_store %arg6[%c0_20, %c0_21], %25 {strides = array<i32>} : memref<1x16xf32, #tpu.memory_space<vmem>>, vector<1x16xf32>,
    return
  }
  func.func @transform_0(%arg0: i32) -> (i32, i32) {
    %c0_i32 = arith.constant 0 : i32
    %c0_i32_0 = arith.constant 0 : i32
    return %arg0, %c0_i32 : i32, i32
  }
  func.func @transform_1(%arg0: i32) -> (i32, i32, i32) {
    %c0_i32 = arith.constant 0 : i32
    %c0_i32_0 = arith.constant 0 : i32
    %c0_i32_1 = arith.constant 0 : i32
    %c0_i32_2 = arith.constant 0 : i32
    return %c0_i32, %c0_i32_0, %c0_i32_1 : i32, i32, i32
  }
  func.func @transform_2(%arg0: i32) -> (i32, i32, i32) {
    %c0_i32 = arith.constant 0 : i32
    %c0_i32_0 = arith.constant 0 : i32
    %c0_i32_1 = arith.constant 0 : i32
    %c0_i32_2 = arith.constant 0 : i32
    return %c0_i32, %c0_i32_0, %c0_i32_1 : i32, i32, i32
  }
  func.func @transform_3(%arg0: i32) -> (i32, i32) {
    %c0_i32 = arith.constant 0 : i32
    %c0_i32_0 = arith.constant 0 : i32
    %c0_i32_1 = arith.constant 0 : i32
    return %c0_i32, %c0_i32_0 : i32, i32
  }
  func.func @transform_4(%arg0: i32) -> (i32, i32) {
    %c0_i32 = arith.constant 0 : i32
    %c0_i32_0 = arith.constant 0 : i32
    %c0_i32_1 = arith.constant 0 : i32
    return %c0_i32, %c0_i32_0 : i32, i32
  }
  func.func @transform_5(%arg0: i32) -> (i32, i32) {
    %c0_i32 = arith.constant 0 : i32
    %c0_i32_0 = arith.constant 0 : i32
    return %c0_i32, %arg0 : i32, i32
  }
}

</mosaic_0001>

<bundles_post_ra>
// kernel: tpu_custom_call.1
= control target key start
LH: loop header
LB: loop body
LE: loop exit
PB: predicated region body
PF: predicated region fallthrough
CT: control target
= control target key end

     0   :  { %s507_s0 = inlined_call_operand.hbm [shape: bf16[16,128], index: 0, kind: input, shape index: {}]   ;;  %s508_s1 = inlined_call_operand.hbm [shape: bf16[2,128,128], index: 1, kind: input, shape index: {}]   ;;  %s509_s2 = inlined_call_operand.vmem [shape: f32[2,1,128], index: 2, kind: input, shape index: {}]   ;;  %s510_s3 = inlined_call_operand.vmem [shape: bf16[1,128], index: 3, kind: input, shape index: {}]   ;;  %s511_s4 = inlined_call_operand.<no memory space> [shape: f32[1,1], index: 4, kind: input, shape index: {}]   ;;  %s512_s5 = inlined_call_operand.hbm [shape: f32[1,16], index: 5, kind: output, shape index: {}]  }
   0x1   :  { %v10_v0 = vstv %s511_s4 }
   0x2   :  { %11 = vst [vmem:[#allocation2] sm:$0x1] %v10_v0 }
   0x3   :  { %12 = vsyncpa [#allocation4], 0 }
   0x4   :  { %13 = vsyncpa [#allocation7], 0 }
   0x5   :  { %14 = vsyncpa [#allocation5], 0  ;;  %s19_s22 = sshll.u32 %s507_s0, 4  ;;  %s450_s23 = smov [#allocation3]   ;;  %s20_s22 = int_to_ptr.hbm [resolvable:$true] %s19_s22 }
   0x6   :  { %s21_s24 = sshll.u32 %s450_s23, 4  ;;  %s32_s27 = sshll.u32 %s508_s1, 4  ;;  %s22_s24 = int_to_ptr.vmem [resolvable:$true] %s21_s24  ;;  %s33_s27 = int_to_ptr.hbm [resolvable:$true] %s32_s27 }
   0x7   :  { %s451_s28 = smov 64   ;;  %s452_s29 = smov 4  }
   0x8   :  { %27 = dma.hbm_to_vmem [thread:$0]  %s20_s22, 128, %s22_s24, [#allocation4], %s451_s28, %s451_s28, %s452_s29  }
   0x9   :  { %s453_s4 = smov [#allocation6]  }
   0xa   :  { %s34_s30 = sshll.u32 %s453_s4, 4  ;;  %s35_s30 = int_to_ptr.vmem [resolvable:$true] %s34_s30 }
   0xb   :  { %40 = dma.hbm_to_vmem [thread:$0]  %s33_s27, 2048, %s35_s30, [#allocation7], %s451_s28, %s451_s28, %s452_s29  }
   0xc   :  { %444 = dma.done.wait [#allocation4], 128  }
   0xd   :  { %445 = vsyncadd [#allocation4], 4294967168 }
   0xe   :  { %446 = dma.done.wait [#allocation7], 2048  }
   0xf   :  { %447 = vsyncadd [#allocation7], 4294965248  ;;  %v354_v1 = vld [vmem:[#allocation6 + $0x38] sm:$0xff]  ;;  %v353_v2 = vld [vmem:[#allocation6 + $0x30] sm:$0xff]  ;;  %v454_v27 = vmov 0   ;;  %s455_s10 = smov [#allocation8]  }
  0x10   :  { %132 = vmatpush.bf16.xpose.msra.mxu0 %v354_v1  ;;  %v352_v3 = vld [vmem:[#allocation6 + $0x28] sm:$0xff]  ;;  %v351_v4 = vld [vmem:[#allocation6 + $0x20] sm:$0xff]  ;;  %v350_v5 = vld [vmem:[#allocation6 + $0x18] sm:$0xff]  ;;  %369 = vset.pattern.permute.xlu0 %v454_v27  ;;  %s264_s11 = sshll.u32 %s455_s10, 4  ;;  %vm257_vm0 = vcmask 122880   ;;  %s265_s11 = int_to_ptr.vmem [resolvable:$true] %s264_s11 }
  0x11   :  { %v362_v6 = vld [vmem:[#allocation6 + $0x78] sm:$0xff]  ;;  %v349_v7 = vld [vmem:[#allocation6 + $0x10] sm:$0xff]  ;;  %v348_v9 = vld [vmem:[#allocation6 + $0x8] sm:$0xff] }
  0x12   :  { %219 = vmatpush.bf16.xpose.msra.mxu1 %v362_v6  ;;  %v361_v8 = vld [vmem:[#allocation6 + $0x70] sm:$0xff]  ;;  %v360_v10 = vld [vmem:[#allocation6 + $0x68] sm:$0xff]  ;;  %v347_v11 = vld [vmem:[#allocation6] sm:$0xff] }
  0x13   :  { %v359_v12 = vld [vmem:[#allocation6 + $0x60] sm:$0xff]  ;;  %v346_v13 = vld [vmem:[#allocation3] sm:$0xff]  ;;  %v357_v15 = vld [vmem:[#allocation6 + $0x50] sm:$0xff] }
  0x14   :  { %v358_v14 = vld [vmem:[#allocation6 + $0x58] sm:$0xff]  ;;  %v356_v16 = vld [vmem:[#allocation6 + $0x48] sm:$0xff]  ;;  %v355_v17 = vld [vmem:[#allocation6 + $0x40] sm:$0xff] }
  0x15   :  { %v370_v19 = vld [vmem:[%s509_s2] ss:$0 sm:$0xff]  ;;  %v371_v29 = vld [vmem:[%s509_s2 + $0x1] ss:$0 sm:$0xff]  ;;  %s266_s2 = sshll.u32 %s512_s5, 4  ;;  %s267_s2 = int_to_ptr.hbm [resolvable:$true] %s266_s2 }
  0x16   :  { %v237_v26 = vld [vmem:[#allocation2] sm:$0x1] }
  0x17   :  { %240 = vperm.xlu0 %369, %v237_v26   ;;  %v236_v36 = vld [vmem:[%s510_s3] sm:$0x1] }
  0x18   :  { %133 = vmatpush.bf16.xpose.msra.mxu0 %v353_v2 }
  0x1a   :  { %220 = vmatpush.bf16.xpose.msra.mxu1 %v361_v8 }
  0x20   :  { %134 = vmatpush.bf16.xpose.msra.mxu0 %v352_v3 }
  0x22   :  { %221 = vmatpush.bf16.xpose.msra.mxu1 %v360_v10 }
  0x28   :  { %135 = vmatpush.bf16.xpose.msra.mxu0 %v351_v4 }
  0x2a   :  { %222 = vmatpush.bf16.xpose.msra.mxu1 %v359_v12 }
  0x30   :  { %136 = vmatpush.bf16.xpose.msra.mxu0 %v350_v5 }
  0x32   :  { %223 = vmatpush.bf16.xpose.msra.mxu1 %v358_v14 }
  0x38   :  { %137 = vmatpush.bf16.xpose.msra.mxu0 %v349_v7 }
  0x3a   :  { %224 = vmatpush.bf16.xpose.msra.mxu1 %v357_v15 }
  0x40   :  { %138 = vmatpush.bf16.xpose.msra.mxu0 %v348_v9 }
  0x42   :  { %225 = vmatpush.bf16.xpose.msra.mxu1 %v356_v16 }
  0x48   :  { %139 = vmatpush.bf16.xpose.msra.mxu0 %v347_v11 }
  0x4a   :  { %226 = vmatpush.bf16.xpose.msra.mxu1 %v355_v17 }
  0x4f   :  { %140 = vmatmul.bf16.vlgmr.msra.gmra.mxu0 %v346_v13 }
  0x89   :  { %v241_v37 = vpop.permute.xlu0 %240 }
  0x8a   :  { %v243_v38 = vperm.slane %v241_v37, 0 }
  0xcc   :  { %v141_v18 = vpop.f32.mrf.mxu0 }
  0xcd   :  { %v142_v20 = vadd.f32 %v370_v19, %v141_v18 }
  0xcf   :  { %v146_v23 = vmax.f32 %v142_v20, 0.0 }
  0xd4   :  { %v143_v21 = vpop.f32.mrf.mxu0 }
  0xd5   :  { %v144_v22 = vadd.f32 %v370_v19, %v143_v21 }
  0xd7   :  { %v147_v24 = vmax.f32 %v144_v22, 0.0 }
  0xd9   :  { %v148_v25 = vpack.c.bf16 %v147_v24, %v146_v23 }
  0xdb   :  { %227 = vmatmul.bf16.vlgmr.msra.gmra.mxu1 %v148_v25 }
 0x158   :  { %v228_v28 = vpop.f32.mrf.mxu1 }
 0x159   :  { %v229_v30 = vadd.f32 %v371_v29, %v228_v28 }
 0x15b   :  { %v233_v33 = vmax.f32 %v229_v30, 0.0 }
 0x160   :  { %v230_v31 = vpop.f32.mrf.mxu1 }
 0x161   :  { %v231_v32 = vadd.f32 %v371_v29, %v230_v31 }
 0x163   :  { %v234_v34 = vmax.f32 %v231_v32, 0.0 }
 0x165   :  { %v235_v35 = vpack.c.bf16 %v234_v34, %v233_v33 }
 0x167   :  { %251 = vmatpush.bf16.xpose.msra.mxu2 %v235_v35 }
 0x16e   :  { %252 = vmatmul.bf16.vlgmr.msra.gmra.mxu2 %v236_v36 }
 0x1f1   :  { %v253_v39 = vpop.f32.mrf.mxu2 }
 0x1f2   :  { %v254_v40 = vadd.f32 %v253_v39, %v243_v38 }
 0x1f4   :  { %258 = vst.msk [vmem:[#allocation8] sm:$0x1] %vm257_vm0, %v254_v40 }
 0x1f5   :  { %269 = dma.vmem_to_hbm [thread:$0]  %s265_s11, 16, %s267_s2, [#allocation5]  }
 0x1f9   :  { %v255_v41 = vpop.f32.mrf.mxu2 }
 0x1fa   :  { %448 = dma.done.wait [#allocation5], 16  }
 0x1fb   :  { %449 = vsyncadd [#allocation5], 4294967280 }
 0x1fc   :  { %274 = vsyncpa [#allocation4], 1 }
 0x1fd   :  { %275 = vsyncpa [#allocation7], 1 }
 0x1fe   :  { %276 = vsyncpa [#allocation5], 1 }

</bundles_post_ra>
